<compile_context>
chip_gen: v5e
topology: v5e:2x2
jax: 0.10.0
libtpu: 0.0.40
codegen_flags: <defaults>
</compile_context>

<pallas_src>
import functools

import jax
import jax.numpy as jnp
from jax import lax
from jax.experimental import pallas as pl
from jax.experimental.pallas import tpu as pltpu


def _round_up(x, m):
    return ((int(x) + m - 1) // m) * m


def _vmem_capacity_bytes():
    """Physical VMEM per TensorCore; conservative 64 MiB (v7x) fallback."""
    try:
        info = pltpu.get_tpu_info()
        cap = int(getattr(info, "vmem_capacity_bytes", 0) or 0)
        if cap > 0:
            return cap
    except Exception:
        pass
    return 64 << 20


_VMEM_CAP = _vmem_capacity_bytes()


def _block_spec(block_shape, index_map, buffer_count=None):
    """BlockSpec with an optional explicit buffer count (graceful fallback)."""
    if buffer_count is not None and hasattr(pl, "Buffered"):
        try:
            return pl.BlockSpec(block_shape, index_map,
                                pipeline_mode=pl.Buffered(buffer_count))
        except TypeError:
            pass
    return pl.BlockSpec(block_shape, index_map)


# --------------------------------------------------------------------------
# Kernels
# --------------------------------------------------------------------------
def _self_output_kernel(x_ref, res_ref, w_ref, p_ref, o_ref, *, eps):
    # x_ref:   [tm, H]  dense-layer input row tile (already in the MXU dtype)
    # res_ref: [tm, H]  residual row tile (input_tensor)
    # w_ref:   [H, H]   pre-transposed dense weight, resident across grid steps
    # p_ref:   [3, H]   packed f32 params: row0 bias, row1 LN gamma, row2 LN beta
    y = jnp.dot(x_ref[...], w_ref[...], preferred_element_type=jnp.float32)
    # TODO(synk): dropout is identity at inference; training-mode PRNG mask not implemented.
    z = y + p_ref[0:1, :] + res_ref[...].astype(jnp.float32)

    # One-pass LayerNorm stats (biased variance, eps inside rsqrt): saves a
    # full [tm, H] f32 traversal vs mean -> centered -> var.
    mean = jnp.mean(z, axis=-1, keepdims=True)
    mean_sq = jnp.mean(z * z, axis=-1, keepdims=True)
    var = jnp.maximum(mean_sq - mean * mean, 0.0)
    inv = lax.rsqrt(var + eps)  # EUP slot; free while the MXU/VPU stream
    o_ref[...] = ((z - mean) * inv * p_ref[1:2, :] + p_ref[2:3, :]).astype(o_ref.dtype)


def _self_output_tiled_kernel(x_ref, res_ref, w_ref, p_ref, o_ref, acc_ref, *, eps):
    # K-tiled fallback: weight streamed as [tk, H] slices, f32 VMEM accumulator.
    # x_ref: [tm, tk], res_ref: [tm, H], w_ref: [tk, H], p_ref: [3, H],
    # o_ref: [tm, H], acc_ref: [tm, H] f32.
    k = pl.program_id(1)

    @pl.when(k == 0)
    def _init():
        acc_ref[...] = jnp.zeros_like(acc_ref)

    acc_ref[...] += jnp.dot(x_ref[...], w_ref[...], preferred_element_type=jnp.float32)

    @pl.when(k == pl.num_programs(1) - 1)
    def _finalize():
        z = acc_ref[...] + p_ref[0:1, :] + res_ref[...].astype(jnp.float32)
        mean = jnp.mean(z, axis=-1, keepdims=True)
        mean_sq = jnp.mean(z * z, axis=-1, keepdims=True)
        var = jnp.maximum(mean_sq - mean * mean, 0.0)
        inv = lax.rsqrt(var + eps)
        o_ref[...] = ((z - mean) * inv * p_ref[1:2, :] + p_ref[2:3, :]).astype(o_ref.dtype)


# --------------------------------------------------------------------------
# Wrapper
# --------------------------------------------------------------------------
@functools.partial(
    jax.jit,
    static_argnames=("eps", "tm", "tk", "mxu_dtype", "force_weight_tiling"))
def husky_qformer_self_output(hidden_states, input_tensor, w_t, bias, gamma, beta,
                              *, eps=1e-12, tm=None, tk=None, mxu_dtype=None,
                              force_weight_tiling=False):
    """hidden_states, input_tensor: [B, S, H]; w_t: [H, H] (== W.T of nn.Linear);
    bias, gamma, beta: [H]."""
    B, S, H = hidden_states.shape
    M = B * S
    out_dtype = hidden_states.dtype

    # MXU operand dtype: bf16 when the activations are already half precision;
    # f32 models keep exact semantics unless the caller opts in (mxu_dtype=bf16).
    act_dt = jnp.dtype(hidden_states.dtype)
    if mxu_dtype is None:
        mxu_dtype = act_dt if act_dt.itemsize >= 4 else jnp.dtype(jnp.bfloat16)
    mxu_dtype = jnp.dtype(mxu_dtype)

    x = hidden_states.reshape(M, H).astype(mxu_dtype)   # only feeds the matmul
    res = input_tensor.reshape(M, H)
    w = w_t.astype(mxu_dtype)                            # cast ONCE on the host
    params = jnp.stack([bias, gamma, beta], axis=0).astype(jnp.float32)  # [3, H]

    x_it = x.dtype.itemsize
    r_it = res.dtype.itemsize
    o_it = jnp.dtype(out_dtype).itemsize
    w_it = w.dtype.itemsize

    budget = int(_VMEM_CAP * 0.8)
    param_bytes = 2 * 8 * H * 4      # [3, H] pads to 8 sublanes, double-buffered
    m_padded = _round_up(max(M, 1), 8)

    if tm is None:
        tm = 1024 if _VMEM_CAP >= (96 << 20) else 512
    tm = max(8, _round_up(tm, 8))
    tm_eff = min(tm, m_padded)

    single_buffer_weight = hasattr(pl, "Buffered")
    w_bufs = 1 if single_buffer_weight else 2
    resident_w_bytes = w_bufs * H * H * w_it

    use_tiled = force_weight_tiling or (H % 128 == 0 and H * H * w_it > _VMEM_CAP // 4)

    kernel_eps = float(eps)
    cost = pl.CostEstimate(
        flops=2 * M * H * H + 8 * M * H,
        transcendentals=M,
        bytes_accessed=int(M * H * (x_it + r_it + o_it) + H * H * w_it + 3 * H * 4),
    )

    def even_grid_tm(t):
        # Prefer an even number of row tiles so v7x's two TensorCores both get work.
        g = pl.cdiv(M, t)
        if g > 1 and g % 2 == 1:
            alt = max(8, _round_up(pl.cdiv(M, g + 1), 8))
            if alt <= t and pl.cdiv(M, alt) % 2 == 0:
                return alt
        return t

    if not use_tiled:
        def footprint(t):
            tiles = 2 * t * H * (x_it + r_it + o_it)   # double-buffered row tiles
            temps = 4 * t * H * 4                      # live f32 intermediates
            return tiles + temps + resident_w_bytes + param_bytes

        while tm_eff > 8 and footprint(tm_eff) > budget:
            tm_eff = max(8, _round_up(tm_eff // 2, 8))
        tm_eff = even_grid_tm(tm_eff)
        grid_m = pl.cdiv(M, tm_eff)

        vmem_limit = int(min(_VMEM_CAP, max(footprint(tm_eff) + (4 << 20), 32 << 20)))

        out = pl.pallas_call(
            functools.partial(_self_output_kernel, eps=kernel_eps),
            out_shape=jax.ShapeDtypeStruct((M, H), out_dtype),
            grid_spec=pltpu.PrefetchScalarGridSpec(
                num_scalar_prefetch=0,
                grid=(grid_m,),
                in_specs=[
                    pl.BlockSpec((tm_eff, H), lambda i: (i, 0)),   # dense input row tile
                    pl.BlockSpec((tm_eff, H), lambda i: (i, 0)),   # residual row tile
                    _block_spec((H, H), lambda i: (0, 0),          # resident weight,
                                buffer_count=1),                   # single-buffered
                    pl.BlockSpec((3, H), lambda i: (0, 0)),        # packed bias/gamma/beta
                ],
                out_specs=pl.BlockSpec((tm_eff, H), lambda i: (i, 0)),
            ),
            compiler_params=pltpu.CompilerParams(
                dimension_semantics=("parallel",),
                vmem_limit_bytes=vmem_limit,
            ),
            cost_estimate=cost,
        )(x, res, w, params)
        return out.reshape(B, S, H)

    # ---- K-tiled fallback: weight streamed in [tk, H] slices, f32 accumulator ----
    if tk is None:
        tk = min(H, 512)
    tk = int(tk)
    if H % 128 == 0:
        tk = max(128, (min(tk, H) // 128) * 128)
        while H % tk != 0:
            tk -= 128
        tk = max(tk, 128)
    else:
        tk = H   # layout rule: the x block's last dim must be 128-aligned or full
    grid_k = H // tk

    def footprint_tiled(t):
        tiles = 2 * (t * tk * x_it + t * H * (r_it + o_it) + tk * H * w_it)
        acc = t * H * 4
        temps = 4 * t * H * 4
        return tiles + acc + temps + param_bytes

    while tm_eff > 8 and footprint_tiled(tm_eff) > budget:
        tm_eff = max(8, _round_up(tm_eff // 2, 8))
    tm_eff = even_grid_tm(tm_eff)
    grid_m = pl.cdiv(M, tm_eff)

    vmem_limit = int(min(_VMEM_CAP, max(footprint_tiled(tm_eff) + (4 << 20), 32 << 20)))

    out = pl.pallas_call(
        functools.partial(_self_output_tiled_kernel, eps=kernel_eps),
        out_shape=jax.ShapeDtypeStruct((M, H), out_dtype),
        grid_spec=pltpu.PrefetchScalarGridSpec(
            num_scalar_prefetch=0,
            grid=(grid_m, grid_k),                              # reduction axis last
            in_specs=[
                pl.BlockSpec((tm_eff, tk), lambda i, k: (i, k)),  # x K-slice
                pl.BlockSpec((tm_eff, H), lambda i, k: (i, 0)),   # residual (revisited)
                pl.BlockSpec((tk, H), lambda i, k: (k, 0)),       # weight K-slice
                pl.BlockSpec((3, H), lambda i, k: (0, 0)),        # packed params
            ],
            out_specs=pl.BlockSpec((tm_eff, H), lambda i, k: (i, 0)),
            scratch_shapes=[pltpu.VMEM((tm_eff, H), jnp.float32)],
        ),
        compiler_params=pltpu.CompilerParams(
            dimension_semantics=("parallel", "arbitrary"),
            vmem_limit_bytes=vmem_limit,
        ),
        cost_estimate=cost,
    )(x, res, w, params)
    return out.reshape(B, S, H)


# --------------------------------------------------------------------------
# Reference + self-test
# --------------------------------------------------------------------------
def _reference(hidden_states, input_tensor, w_t, bias, gamma, beta, eps):
    y = jnp.einsum(
        "bsh,hk->bsk",
        hidden_states.astype(jnp.float32),
        w_t.astype(jnp.float32),
        precision=lax.Precision.HIGHEST,
    ) + bias.astype(jnp.float32)
    z = y + input_tensor.astype(jnp.float32)
    mean = jnp.mean(z, axis=-1, keepdims=True)
    zc = z - mean
    var = jnp.mean(zc * zc, axis=-1, keepdims=True)
    return zc * lax.rsqrt(var + eps) * gamma.astype(jnp.float32) + beta.astype(jnp.float32)


if __name__ == "__main__":
    eps = 1e-12

    def make_case(key, B, S, H, dtype):
        ks = jax.random.split(key, 6)
        hs = jax.random.normal(ks[0], (B, S, H), jnp.float32).astype(dtype)
        it = jax.random.normal(ks[1], (B, S, H), jnp.float32).astype(dtype)
        w = (jax.random.normal(ks[2], (H, H), jnp.float32) / jnp.sqrt(H)).astype(dtype)
        b = 0.02 * jax.random.normal(ks[3], (H,), jnp.float32)
        g = 1.0 + 0.1 * jax.random.normal(ks[4], (H,), jnp.float32)
        be = 0.1 * jax.random.normal(ks[5], (H,), jnp.float32)
        return hs, it, w.T, b, g, be

    def check(name, out, expected_shape, ref_f32, atol, rtol):
        assert out.shape == expected_shape, (name, out.shape)
        o = out.astype(jnp.float32)
        err = float(jnp.max(jnp.abs(o - ref_f32)))
        assert jnp.allclose(o, ref_f32, atol=atol, rtol=rtol), (name, err)

    root = jax.random.PRNGKey(0)
    k1, k2, k3 = jax.random.split(root, 3)

    # Case 1: f32, small module config (hidden_size=32), resident-weight path.
    B, S, H = 2, 8, 32
    args = make_case(k1, B, S, H, jnp.float32)
    out1 = jax.block_until_ready(husky_qformer_self_output(*args, eps=eps))
    check("f32_resident", out1, (B, S, H), _reference(*args, eps), 1e-4, 1e-4)

    # Case 2: bf16 activations/weights -> bf16 MXU operands, f32 accumulation.
    args_bf16 = make_case(k2, B, S, H, jnp.bfloat16)
    out2 = jax.block_until_ready(husky_qformer_self_output(*args_bf16, eps=eps))
    check("bf16_resident", out2, (B, S, H), _reference(*args_bf16, eps), 5e-2, 5e-2)

    # Case 3: forced K-tiled weight path (v7x large-H fallback), H=256, tk=128.
    B3, S3, H3 = 2, 8, 256
    args_t = make_case(k3, B3, S3, H3, jnp.float32)
    out3 = jax.block_until_ready(
        husky_qformer_self_output(*args_t, eps=eps, force_weight_tiling=True, tk=128))
    check("f32_tiled", out3, (B3, S3, H3), _reference(*args_t, eps), 1e-3, 1e-3)

    print("KERNEL_OK")
</pallas_src>

<mosaic_0001>
module attributes {stable_mosaic.version = 11 : i64} {
  func.func @_self_output_kernel(%arg0: i32, %arg1: memref<16x32xf32, #tpu.memory_space<vmem>>, %arg2: memref<16x32xf32, #tpu.memory_space<vmem>>, %arg3: memref<32x32xf32, #tpu.memory_space<vmem>>, %arg4: memref<3x32xf32, #tpu.memory_space<vmem>>, %arg5: memref<16x32xf32, #tpu.memory_space<vmem>>) attributes {dimension_semantics = [#tpu.dimension_semantics<parallel>], iteration_bounds = array<i64: 1>, scalar_prefetch = 0 : i64, scratch_operands = 0 : i64, tpu.core_type = #tpu.core_type<tc>, window_params = [{transform_indices = @transform_0, window_bounds = array<i64: 16, 32>}, {transform_indices = @transform_1, window_bounds = array<i64: 16, 32>}, {pipeline_mode = #tpu.pipeline_mode<synchronous>, transform_indices = @transform_2, window_bounds = array<i64: 32, 32>}, {pipeline_mode = #tpu.pipeline_mode<synchronous>, transform_indices = @transform_3, window_bounds = array<i64: 3, 32>}, {transform_indices = @transform_4, window_bounds = array<i64: 16, 32>}]} {
    %c0 = arith.constant 0 : index
    %c0_0 = arith.constant 0 : index
    %0 = vector.load %arg1[%c0, %c0_0] : memref<16x32xf32, #tpu.memory_space<vmem>>, vector<16x32xf32>
    %c0_1 = arith.constant 0 : index
    %c0_2 = arith.constant 0 : index
    %1 = vector.load %arg3[%c0_1, %c0_2] : memref<32x32xf32, #tpu.memory_space<vmem>>, vector<32x32xf32>
    %cst = arith.constant dense<0.000000e+00> : vector<16x32xf32>
    %2 = tpu.matmul %0, %1, %cst {dimension_numbers = #tpu.dot_dimension_numbers<[1], [0], [0], [1], [0, 0, 1, 1], [], []>} : vector<16x32xf32>, vector<32x32xf32>, vector<16x32xf32> -> vector<16x32xf32>
    %c0_3 = arith.constant 0 : index
    %c0_4 = arith.constant 0 : index
    %3 = vector.load %arg4[%c0_3, %c0_4] : memref<3x32xf32, #tpu.memory_space<vmem>>, vector<1x32xf32>
    %4 = vector.broadcast %3 : vector<1x32xf32> to vector<16x32xf32>
    %5 = arith.addf %2, %4 : vector<16x32xf32>
    %c0_5 = arith.constant 0 : index
    %c0_6 = arith.constant 0 : index
    %6 = vector.load %arg2[%c0_5, %c0_6] : memref<16x32xf32, #tpu.memory_space<vmem>>, vector<16x32xf32>
    %7 = arith.addf %5, %6 : vector<16x32xf32>
    %cst_7 = arith.constant dense<0.000000e+00> : vector<16xf32>
    %8 = vector.multi_reduction <add>, %7, %cst_7 [1] : vector<16x32xf32> to vector<16xf32>
    %9 = vector.shape_cast %8 : vector<16xf32> to vector<16x1xf32>
    %cst_8 = arith.constant 3.200000e+01 : f32
    %10 = vector.broadcast %cst_8 : f32 to vector<16x1xf32>
    %11 = arith.divf %9, %10 : vector<16x1xf32>
    %12 = arith.mulf %7, %7 : vector<16x32xf32>
    %cst_9 = arith.constant dense<0.000000e+00> : vector<16xf32>
    %13 = vector.multi_reduction <add>, %12, %cst_9 [1] : vector<16x32xf32> to vector<16xf32>
    %14 = vector.shape_cast %13 : vector<16xf32> to vector<16x1xf32>
    %cst_10 = arith.constant 3.200000e+01 : f32
    %15 = vector.broadcast %cst_10 : f32 to vector<16x1xf32>
    %16 = arith.divf %14, %15 : vector<16x1xf32>
    %17 = arith.mulf %11, %11 : vector<16x1xf32>
    %18 = arith.subf %16, %17 : vector<16x1xf32>
    %cst_11 = arith.constant 0.000000e+00 : f32
    %19 = vector.broadcast %cst_11 : f32 to vector<16x1xf32>
    %20 = arith.maximumf %18, %19 : vector<16x1xf32>
    %cst_12 = arith.constant 9.99999996E-13 : f32
    %21 = vector.broadcast %cst_12 : f32 to vector<16x1xf32>
    %22 = arith.addf %20, %21 : vector<16x1xf32>
    %23 = math.rsqrt %22 : vector<16x1xf32>
    %24 = vector.broadcast %11 : vector<16x1xf32> to vector<16x32xf32>
    %25 = arith.subf %7, %24 : vector<16x32xf32>
    %26 = vector.broadcast %23 : vector<16x1xf32> to vector<16x32xf32>
    %27 = arith.mulf %25, %26 : vector<16x32xf32>
    %c1 = arith.constant 1 : index
    %c0_13 = arith.constant 0 : index
    %28 = vector.load %arg4[%c1, %c0_13] : memref<3x32xf32, #tpu.memory_space<vmem>>, vector<1x32xf32>
    %29 = vector.broadcast %28 : vector<1x32xf32> to vector<16x32xf32>
    %30 = arith.mulf %27, %29 : vector<16x32xf32>
    %c2 = arith.constant 2 : index
    %c0_14 = arith.constant 0 : index
    %31 = vector.load %arg4[%c2, %c0_14] : memref<3x32xf32, #tpu.memory_space<vmem>>, vector<1x32xf32>
    %32 = vector.broadcast %31 : vector<1x32xf32> to vector<16x32xf32>
    %33 = arith.addf %30, %32 : vector<16x32xf32>
    %c0_15 = arith.constant 0 : index
    %c0_16 = arith.constant 0 : index
    %34 = vector.load %arg5[%c0_15, %c0_16] : memref<16x32xf32, #tpu.memory_space<vmem>>, vector<16x32xf32>
    tpu.vector_store %arg5[%c0_15, %c0_16], %33 {strides = array<i32>} : memref<16x32xf32, #tpu.memory_space<vmem>>, vector<16x32xf32>,
    return
  }
  func.func @transform_0(%arg0: i32) -> (i32, i32) {
    %c0_i32 = arith.constant 0 : i32
    %c0_i32_0 = arith.constant 0 : i32
    return %arg0, %c0_i32 : i32, i32
  }
  func.func @transform_1(%arg0: i32) -> (i32, i32) {
    %c0_i32 = arith.constant 0 : i32
    %c0_i32_0 = arith.constant 0 : i32
    return %arg0, %c0_i32 : i32, i32
  }
  func.func @transform_2(%arg0: i32) -> (i32, i32) {
    %c0_i32 = arith.constant 0 : i32
    %c0_i32_0 = arith.constant 0 : i32
    %c0_i32_1 = arith.constant 0 : i32
    return %c0_i32, %c0_i32_0 : i32, i32
  }
  func.func @transform_3(%arg0: i32) -> (i32, i32) {
    %c0_i32 = arith.constant 0 : i32
    %c0_i32_0 = arith.constant 0 : i32
    %c0_i32_1 = arith.constant 0 : i32
    return %c0_i32, %c0_i32_0 : i32, i32
  }
  func.func @transform_4(%arg0: i32) -> (i32, i32) {
    %c0_i32 = arith.constant 0 : i32
    %c0_i32_0 = arith.constant 0 : i32
    return %arg0, %c0_i32 : i32, i32
  }
}

</mosaic_0001>

<bundles_post_ra>
// kernel: husky_qformer_self_output.1
= control target key start
LH: loop header
LB: loop body
LE: loop exit
PB: predicated region body
PF: predicated region fallthrough
CT: control target
= control target key end

     0   :  { %9 = vsyncpa [#allocation3], 0  ;;  %s397_s0 = inlined_call_operand.hbm [shape: f32[16,32], index: 0, kind: input, shape index: {}]   ;;  %s398_s1 = inlined_call_operand.hbm [shape: f32[16,32], index: 1, kind: input, shape index: {}]   ;;  %s399_s2 = inlined_call_operand.hbm [shape: f32[32,32], index: 2, kind: input, shape index: {}]   ;;  %s400_s3 = inlined_call_operand.vmem [shape: f32[3,32], index: 3, kind: input, shape index: {}]   ;;  %s401_s4 = inlined_call_operand.hbm [shape: f32[16,32], index: 4, kind: output, shape index: {}]  }
   0x1   :  { %10 = vsyncpa [#allocation6], 0 }
   0x2   :  { %11 = vsyncpa [#allocation4], 0  ;;  %s29_s17 = sshll.u32 %s398_s1, 4  ;;  %s318_s18 = smov [#allocation5]   ;;  %s30_s17 = int_to_ptr.hbm [resolvable:$true] %s29_s17 }
   0x3   :  { %s31_s19 = sshll.u32 %s318_s18, 4  ;;  %s16_s22 = sshll.u32 %s397_s0, 4  ;;  %s32_s19 = int_to_ptr.vmem [resolvable:$true] %s31_s19  ;;  %s17_s22 = int_to_ptr.hbm [resolvable:$true] %s16_s22 }
   0x4   :  { %s319_s23 = smov 128   ;;  %s320_s24 = smov 8  }
   0x5   :  { %37 = dma.hbm_to_vmem [thread:$0]  %s30_s17, 256, %s32_s19, [#allocation6], %s319_s23, %s319_s23, %s320_s24  }
   0x6   :  { %s321_s25 = smov [#allocation2]   ;;  %s42_s1 = sshll.u32 %s399_s2, 4  ;;  %s43_s1 = int_to_ptr.hbm [resolvable:$true] %s42_s1 }
   0x7   :  { %s18_s26 = sshll.u32 %s321_s25, 4  ;;  %s322_s0 = smov [#allocation7]   ;;  %s19_s26 = int_to_ptr.vmem [resolvable:$true] %s18_s26 }
   0x8   :  { %24 = dma.hbm_to_vmem [thread:$0]  %s17_s22, 256, %s19_s26, [#allocation3], %s319_s23, %s319_s23, %s320_s24  }
   0x9   :  { %s44_s29 = sshll.u32 %s322_s0, 4  ;;  %s45_s29 = int_to_ptr.vmem [resolvable:$true] %s44_s29 }
   0xa   :  { %50 = dma.hbm_to_vmem [thread:$0]  %s43_s1, 512, %s45_s29, [#allocation6], %s319_s23, %s319_s23, %s320_s24  }
   0xb   :  { %312 = dma.done.wait [#allocation3], 256  }
   0xc   :  { %313 = vsyncadd [#allocation3], 4294967040 }
   0xd   :  { %314 = dma.done.wait [#allocation6], 768  }
   0xe   :  { %315 = vsyncadd [#allocation6], 4294966528  ;;  %v70_v0 = vld [vmem:[#allocation7 + $0x18] sm:$0xff]  ;;  %v69_v1 = vld [vmem:[#allocation7 + $0x10] sm:$0xff]  ;;  %vm73_vm0 = vcmask 261120   ;;  %v323_v21 = vmov 32.0  }
   0xf   :  { %92 = vmatpush.msra.mxu0 %v70_v0  ;;  %196 = vmatpush.msra.mxu1 %v70_v0  ;;  %v68_v2 = vld [vmem:[#allocation7 + $0x8] sm:$0xff]  ;;  %v67_v3 = vld [vmem:[#allocation7] sm:$0xff]  ;;  %v103_v8 = vld [vmem:[#allocation5] sm:$0xff]  ;;  %210 = vrcp.f32 %v323_v21  ;;  %s324_s9 = smov [#allocation8]  }
  0x10   :  { %v65_v4 = vld [vmem:[#allocation2] sm:$0xff]  ;;  %v66_v5 = vld [vmem:[#allocation2 + $0x8] sm:$0xff]  ;;  %v104_v12 = vld [vmem:[#allocation5 + $0x8] sm:$0xff]  ;;  %s178_s10 = sshll.u32 %s324_s9, 4  ;;  %s179_s10 = int_to_ptr.vmem [resolvable:$true] %s178_s10 }
  0x11   :  { %93 = vmatpush.msra.mxu0 %v69_v1  ;;  %197 = vmatpush.msra.mxu1 %v69_v1  ;;  %v207_v6 = vld [vmem:[%s400_s3] ss:$0 sm:$0xff]  ;;  %v208_v53 = vld [vmem:[%s400_s3 + $0x1] ss:$0 sm:$0xff]  ;;  %v209_v57 = vld [vmem:[%s400_s3 + $0x2] ss:$0 sm:$0xff] }
  0x12   :  { %s180_s3 = sshll.u32 %s401_s4, 4  ;;  %s181_s3 = int_to_ptr.hbm [resolvable:$true] %s180_s3 }
  0x13   :  { %94 = vmatpush.msra.mxu0 %v68_v2  ;;  %198 = vmatpush.msra.mxu1 %v68_v2 }
  0x15   :  { %95 = vmatpush.msra.mxu0 %v67_v3  ;;  %199 = vmatpush.msra.mxu1 %v67_v3  ;;  %v211_v22 = vpop.eup %210 }
  0x16   :  { %194 = vmatmul.msk.f32.vlgmr.msra.gmra.mxu0 %vm73_vm0, %v65_v4  ;;  %195 = vmatmul.msk.f32.vlgmr.msra.gmra.mxu1 %vm73_vm0, %v66_v5  ;;  %v114_v23 = vmul.f32 32.0, %v211_v22  ;;  %vm118_vm1 = vweird.f32 %v211_v22 }
  0x18   :  { %v115_v24 = vsub.f32 1.0, %v114_v23 }
  0x1a   :  { %v116_v25 = vmul.f32 %v211_v22, %v115_v24 }
  0x1c   :  { %v117_v26 = vadd.f32 %v211_v22, %v116_v25 }
  0x1e   :  { %v119_v27 = vsel %vm118_vm1, %v211_v22, %v117_v26 }
  0x93   :  { %v97_v7 = vpop.f32.mrf.mxu0  ;;  %v100_v9 = vpop.f32.mrf.mxu1 }
  0x94   :  { %v98_v10 = vadd.f32 %v207_v6, %v97_v7  ;;  %v101_v11 = vadd.f32 %v207_v6, %v100_v9 }
  0x96   :  { %v105_v13 = vadd.f32 %v103_v8, %v98_v10  ;;  %v374_v15 = vadd.f32 %v104_v12, %v101_v11 }
  0x98   :  { %v107_v14 = vsel %vm73_vm0, %v105_v13, 0.0  ;;  %v122_v16 = vmul.f32 %v105_v13, %v105_v13  ;;  %v123_v18 = vmul.f32 %v374_v15, %v374_v15  ;;  %v110_v19 = vsel %vm73_vm0, %v374_v15, 0.0 }
  0x99   :  { %108 = vadd.xlane.f32.xlu0 %v107_v14 }
  0x9a   :  { %v124_v17 = vsel %vm73_vm0, %v122_v16, 0.0  ;;  %v127_v20 = vsel %vm73_vm0, %v123_v18, 0.0 }
  0x9b   :  { %125 = vadd.xlane.f32.xlu1 %v124_v17 }
  0xa1   :  { %111 = vadd.xlane.f32.xlu0 %v110_v19 }
  0xa3   :  { %128 = vadd.xlane.f32.xlu1 %v127_v20 }
 0x10c   :  { %v109_v28 = vpop.xlane.xlu0 %108 }
 0x10d   :  { %v120_v29 = vmul.f32 %v119_v27, %v109_v28 }
 0x10e   :  { %v126_v30 = vpop.xlane.xlu1 %125 }
 0x10f   :  { %v132_v31 = vmul.f32 %v120_v29, %v120_v29  ;;  %v130_v32 = vmul.f32 %v126_v30, %v119_v27  ;;  %v160_v51 = vsub.f32 %v105_v13, %v120_v29 }
 0x111   :  { %v134_v33 = vsub.f32 %v130_v32, %v132_v31 }
 0x113   :  { %v136_v34 = vmax.f32 %v134_v33, 0.0 }
 0x114   :  { %v112_v35 = vpop.xlane.xlu0 %111 }
 0x115   :  { %v138_v36 = vadd.f32 1e-12, %v136_v34  ;;  %v121_v37 = vmul.f32 %v119_v27, %v112_v35 }
 0x116   :  { %v129_v38 = vpop.xlane.xlu1 %128 }
 0x117   :  { %212 = vrsqrt.f32 %v138_v36  ;;  %v133_v39 = vmul.f32 %v121_v37, %v121_v37  ;;  %v131_v40 = vmul.f32 %v129_v38, %v119_v27  ;;  %vm146_vm3 = vweird.f32 %v138_v36 }
 0x118   :  { %v161_v63 = vsub.f32 %v374_v15, %v121_v37 }
 0x119   :  { %v135_v41 = vsub.f32 %v131_v40, %v133_v39 }
 0x11b   :  { %v137_v42 = vmax.f32 %v135_v41, 0.0 }
 0x11d   :  { %v213_v43 = vpop.eup %212  ;;  %v139_v45 = vadd.f32 1e-12, %v137_v42 }
 0x11e   :  { %v141_v44 = vmul.f32 %v213_v43, %v138_v36  ;;  %vm147_vm2 = vweird.f32 %v213_v43 }
 0x11f   :  { %214 = vrsqrt.f32 %v139_v45  ;;  %vm148_vm4 = vmor %vm146_vm3, %vm147_vm2  ;;  %vm156_vm6 = vweird.f32 %v139_v45 }
 0x120   :  { %v142_v46 = vmul.f32 %v213_v43, %v141_v44 }
 0x122   :  { %v143_v47 = vmul.f32 0.5, %v142_v46 }
 0x124   :  { %v144_v48 = vsub.f32 1.5, %v143_v47 }
 0x125   :  { %v215_v49 = vpop.eup %214 }
 0x126   :  { %v145_v50 = vmul.f32 %v213_v43, %v144_v48  ;;  %v151_v52 = vmul.f32 %v215_v49, %v139_v45  ;;  %vm157_vm5 = vweird.f32 %v215_v49 }
 0x127   :  { %vm158_vm7 = vmor %vm156_vm6, %vm157_vm5 }
 0x128   :  { %v149_v54 = vsel %vm148_vm4, %v213_v43, %v145_v50  ;;  %v152_v56 = vmul.f32 %v215_v49, %v151_v52 }
 0x129   :  { %v162_v55 = vmul.f32 %v160_v51, %v149_v54 }
 0x12a   :  { %v153_v58 = vmul.f32 0.5, %v152_v56 }
 0x12b   :  { %v166_v59 = vmul.f32 %v208_v53, %v162_v55 }
 0x12c   :  { %v154_v60 = vsub.f32 1.5, %v153_v58 }
 0x12d   :  { %v170_v61 = vadd.f32 %v209_v57, %v166_v59 }
 0x12e   :  { %v155_v62 = vmul.f32 %v215_v49, %v154_v60 }
 0x12f   :  { %172 = vst.msk [vmem:[#allocation8] sm:$0xff] %vm73_vm0, %v170_v61 }
 0x130   :  { %v159_v0 = vsel %vm158_vm7, %v215_v49, %v155_v62 }
 0x131   :  { %v163_v1 = vmul.f32 %v161_v63, %v159_v0 }
 0x133   :  { %v167_v2 = vmul.f32 %v208_v53, %v163_v1 }
 0x135   :  { %v171_v3 = vadd.f32 %v209_v57, %v167_v2 }
 0x137   :  { %173 = vst.msk [vmem:[#allocation8 + $0x8] sm:$0xff] %vm73_vm0, %v171_v3 }
 0x138   :  { %186 = dma.vmem_to_hbm [thread:$0]  %s179_s10, 256, %s181_s3, [#allocation4], %s319_s23, %s319_s23, %s320_s24  }
 0x139   :  { %316 = dma.done.wait [#allocation4], 256  }
 0x13a   :  { %317 = vsyncadd [#allocation4], 4294967040 }
 0x13b   :  { %191 = vsyncpa [#allocation3], 1 }
 0x13c   :  { %192 = vsyncpa [#allocation6], 1 }
 0x13d   :  { %193 = vsyncpa [#allocation4], 1 }

</bundles_post_ra>
